<compile_context>
chip_gen: v6e
topology: v6e:2x2x1
jax: 0.10.0
libtpu: 0.0.40
codegen_flags: <defaults>
</compile_context>

<pallas_src>
import functools

import jax
import jax.numpy as jnp
from jax.experimental import pallas as pl
from jax.experimental.pallas import tpu as pltpu

_LANE = 128


# ------------------------------ sizing helpers ------------------------------

def _round_up(x, m):
    return -(-x // m) * m


def _vmem_limit_bytes():
    """Per-generation scoped VMEM budget (conservative if undetectable)."""
    try:
        cap = pltpu.get_tpu_info().vmem_capacity_bytes
    except Exception:
        cap = 0
    if cap >= 128 * 1024 * 1024:          # v5e / v6e: 128 MiB physical
        return 64 * 1024 * 1024
    return 32 * 1024 * 1024               # v7x (64 MiB physical) or unknown


def _pick_fused_bt(b, c, hw, itemsize, vmem_limit):
    """Largest batch tile whose fused slab pipeline fits VMEM; None if even
    bt=1 does not fit (caller then uses the two-pass path).  Keeps >=2 grid
    blocks when B >= 2 so both v7x TensorCores stream HBM."""
    slab1 = c * hw * itemsize                    # one (1, C, HW) slab
    budget = vmem_limit - 2 * 1024 * 1024        # headroom for weights/temps
    if 5 * slab1 > budget:                       # 2x in + 2x out bufs + temp
        return None
    target = 4 * 1024 * 1024                     # diminishing returns beyond
    bt = 1
    for d in range(2, b + 1):
        if b % d:
            continue
        if 5 * d * slab1 > budget or (b // d) < 2 or d * slab1 > target:
            break
        bt = d
    return bt


def _pick_hw_tile(hw, c, itemsize, target_bytes):
    """Lane-dense HW tile: a multiple of 128 near the byte target (never the
    raw full HW, which blew up VMEM for 56x56 / 28x28 style feature maps)."""
    lanes = max(_LANE, (target_bytes // (c * itemsize)) // _LANE * _LANE)
    return min(lanes, _round_up(hw, _LANE))


# --------------------------------- kernels ----------------------------------

def _fused_kernel(x_ref, w1_ref, b1_ref, w2_ref, b2_ref, o_ref, *, inv_hw):
    """One (bt, C, HW) slab resident in VMEM: pool + MLP + sigmoid + rescale."""
    hw = x_ref.shape[-1]

    # Squeeze: spatial mean.  Lane-aligned VPU accumulation into a 128-wide
    # partial, one XLU cross-lane reduce at the end (static slices are views).
    if hw % _LANE == 0 and hw > _LANE:
        acc = x_ref[:, :, 0:_LANE].astype(jnp.float32)
        for j in range(1, hw // _LANE):
            acc = acc + x_ref[:, :, j * _LANE:(j + 1) * _LANE].astype(jnp.float32)
        pooled = jnp.sum(acc, axis=-1) * inv_hw                      # (bt, C)
    else:
        pooled = jnp.sum(x_ref[...].astype(jnp.float32), axis=-1) * inv_hw

    # Excitation MLP (tiny; hidden under the slab DMA).
    h = jnp.dot(pooled, w1_ref[...], preferred_element_type=jnp.float32)
    h = h + b1_ref[...]
    h = jnp.where(h > 0, h, 0.01 * h)                                # LeakyReLU(0.01)
    z = jnp.dot(h, w2_ref[...], preferred_element_type=jnp.float32)
    z = z + b2_ref[...]
    gate = 1.0 / (1.0 + jnp.exp(-z))                                 # exact sigmoid

    # Scale the resident slab and write it out once.
    o_ref[...] = (x_ref[...].astype(jnp.float32) * gate[:, :, None]).astype(o_ref.dtype)


def _pool_sum_kernel(x_ref, sums_ref, acc_ref, *, hw, hwt):
    """Streaming spatial-sum: x block (1, C, hwt); acc (1, C, 128) f32 in VMEM.
    Lane-aligned VPU adds per 128-chunk; padded tail lanes masked out; one XLU
    reduce per batch row on the last HW tile."""
    hi = pl.program_id(1)

    @pl.when(hi == 0)
    def _():
        acc_ref[...] = jnp.zeros_like(acc_ref)

    needs_mask = (hw % hwt) != 0
    base = hi * hwt
    if needs_mask:
        lane = jax.lax.broadcasted_iota(jnp.int32, acc_ref.shape, 2)
    for j in range(hwt // _LANE):
        chunk = x_ref[:, :, j * _LANE:(j + 1) * _LANE].astype(jnp.float32)
        if needs_mask:
            chunk = jnp.where(base + j * _LANE + lane < hw, chunk, 0.0)
        acc_ref[...] += chunk

    @pl.when(hi == pl.num_programs(1) - 1)
    def _():
        sums_ref[...] = jnp.sum(acc_ref[...], axis=-1)[:, :, None]   # (1, C, 1)


def _scale_kernel(gate_ref, x_ref, o_ref):
    """gate (1, C, 1) -> pure lane splat over the (1, C, hwt) x block."""
    o_ref[...] = (x_ref[...].astype(jnp.float32) * gate_ref[...]).astype(o_ref.dtype)


# --------------------------------- wrapper ----------------------------------

def se_block(x_nchw, w1, b1, w2, b2, *, force_two_pass=False, hw_tile_bytes=None):
    """SEBlock forward.

    x_nchw: (B, C, H, W).
    w1: (hid, C), b1: (hid,), w2: (C, hid), b2: (C,)  -- torch nn.Linear layout
    (weight is (out_features, in_features)); transposed here for in @ W form.
    """
    B, C, H, W = x_nchw.shape
    HW = H * W
    hid = w1.shape[0]
    itemsize = jnp.dtype(x_nchw.dtype).itemsize

    x_flat = x_nchw.reshape(B, C, HW)
    w1_t = w1.T.astype(jnp.float32)               # (C, hid)
    w2_t = w2.T.astype(jnp.float32)               # (hid, C)
    b1_2d = b1.reshape(1, hid).astype(jnp.float32)
    b2_2d = b2.reshape(1, C).astype(jnp.float32)

    vmem_limit = _vmem_limit_bytes()
    bt = None if force_two_pass else _pick_fused_bt(B, C, HW, itemsize, vmem_limit)

    # ------------------- fused single-pass path (1R + 1W) -------------------
    if bt is not None:
        nb = B // bt
        out_flat = pl.pallas_call(
            functools.partial(_fused_kernel, inv_hw=1.0 / HW),
            out_shape=jax.ShapeDtypeStruct((B, C, HW), x_nchw.dtype),
            grid_spec=pltpu.PrefetchScalarGridSpec(
                num_scalar_prefetch=0,
                grid=(nb,),
                in_specs=[
                    pl.BlockSpec((bt, C, HW), lambda bi: (bi, 0, 0)),
                    pl.BlockSpec((C, hid), lambda bi: (0, 0)),
                    pl.BlockSpec((1, hid), lambda bi: (0, 0)),
                    pl.BlockSpec((hid, C), lambda bi: (0, 0)),
                    pl.BlockSpec((1, C), lambda bi: (0, 0)),
                ],
                out_specs=pl.BlockSpec((bt, C, HW), lambda bi: (bi, 0, 0)),
            ),
            compiler_params=pltpu.CompilerParams(
                dimension_semantics=("parallel",),
                vmem_limit_bytes=vmem_limit),
        )(x_flat, w1_t, b1_2d, w2_t, b2_2d)
        return out_flat.reshape(B, C, H, W)

    # --------------------- two-pass streaming fallback ----------------------
    if hw_tile_bytes is None:
        hw_tile_bytes = (4 * 1024 * 1024 if vmem_limit >= 64 * 1024 * 1024
                         else 2 * 1024 * 1024)
    hwt = _pick_hw_tile(HW, C, itemsize, hw_tile_bytes)
    nhw = -(-HW // hwt)

    # Pass 1: pooled spatial sums -> (B, C, 1).
    sums = pl.pallas_call(
        functools.partial(_pool_sum_kernel, hw=HW, hwt=hwt),
        out_shape=jax.ShapeDtypeStruct((B, C, 1), jnp.float32),
        grid_spec=pltpu.PrefetchScalarGridSpec(
            num_scalar_prefetch=0,
            grid=(B, nhw),                          # reduction (HW) axis last
            in_specs=[pl.BlockSpec((1, C, hwt), lambda bi, hi: (bi, 0, hi))],
            out_specs=pl.BlockSpec((1, C, 1), lambda bi, hi: (bi, 0, 0)),
            scratch_shapes=[pltpu.VMEM((1, C, _LANE), jnp.float32)],
        ),
        compiler_params=pltpu.CompilerParams(
            dimension_semantics=("parallel", "arbitrary"),
            vmem_limit_bytes=vmem_limit),
    )(x_flat)

    # Excitation MLP hoisted out of the streaming pass: one (B, C) matmul pair.
    pooled = sums.reshape(B, C) * (1.0 / HW)
    h = pooled @ w1_t + b1_2d
    h = jnp.where(h > 0, h, 0.01 * h)
    gate = jax.nn.sigmoid(h @ w2_t + b2_2d)
    gate3 = gate.reshape(B, C, 1).astype(jnp.float32)

    # Pass 2: elementwise per-channel rescale (mem-bound, lane-dense).
    out_flat = pl.pallas_call(
        _scale_kernel,
        out_shape=jax.ShapeDtypeStruct((B, C, HW), x_nchw.dtype),
        grid_spec=pltpu.PrefetchScalarGridSpec(
            num_scalar_prefetch=0,
            grid=(B, nhw),
            in_specs=[
                pl.BlockSpec((1, C, 1), lambda bi, hi: (bi, 0, 0)),
                pl.BlockSpec((1, C, hwt), lambda bi, hi: (bi, 0, hi)),
            ],
            out_specs=pl.BlockSpec((1, C, hwt), lambda bi, hi: (bi, 0, hi)),
        ),
        compiler_params=pltpu.CompilerParams(
            dimension_semantics=("parallel", "parallel"),
            vmem_limit_bytes=vmem_limit),
    )(gate3, x_flat)

    return out_flat.reshape(B, C, H, W)


# -------------------------------- reference ---------------------------------

def _reference(x, w1, b1, w2, b2):
    pooled = jnp.mean(x, axis=(2, 3))                  # (B, C)
    h = pooled @ w1.T + b1
    h = jnp.where(h > 0, h, 0.01 * h)
    y = jax.nn.sigmoid(h @ w2.T + b2)
    return x * y[:, :, None, None]


if __name__ == "__main__":
    # Use full-f32 matmuls everywhere (kernel MXU dots and the XLA reference)
    # so the comparison is precision-apples-to-apples.
    jax.config.update("jax_default_matmul_precision", "highest")

    key = jax.random.PRNGKey(0)
    B, C, H, W = 2, 64, 16, 16        # input_dim=64 -> hidden = 64 // 16 = 4
    hid = C // 16

    k_x, k_w1, k_b1, k_w2, k_b2 = jax.random.split(key, 5)
    x = jax.random.normal(k_x, (B, C, H, W), dtype=jnp.float32)

    # torch nn.Linear-style params: weight is (out_features, in_features).
    lim1 = 1.0 / (C ** 0.5)
    lim2 = 1.0 / (hid ** 0.5)
    w1 = jax.random.uniform(k_w1, (hid, C), minval=-lim1, maxval=lim1, dtype=jnp.float32)
    b1 = jax.random.uniform(k_b1, (hid,), minval=-lim1, maxval=lim1, dtype=jnp.float32)
    w2 = jax.random.uniform(k_w2, (C, hid), minval=-lim2, maxval=lim2, dtype=jnp.float32)
    b2 = jax.random.uniform(k_b2, (C,), minval=-lim2, maxval=lim2, dtype=jnp.float32)

    ref = _reference(x, w1, b1, w2, b2)

    # Fused single-pass path (slab fits VMEM at this size).
    out = se_block(x, w1, b1, w2, b2)
    jax.block_until_ready(out)
    assert out.shape == (B, C, H, W)
    assert jnp.allclose(out, ref, atol=2e-5, rtol=2e-5), "fused path mismatch"

    # Streaming two-pass fallback (small HW tile forces multiple HW steps).
    out2p = se_block(x, w1, b1, w2, b2, force_two_pass=True,
                     hw_tile_bytes=C * 4 * _LANE)
    jax.block_until_ready(out2p)
    assert jnp.allclose(out2p, ref, atol=2e-5, rtol=2e-5), "two-pass path mismatch"

    # Non-128-divisible spatial size -> padded tail tile must be masked.
    x_t = jax.random.normal(jax.random.PRNGKey(1), (B, C, 20, 20), dtype=jnp.float32)
    ref_t = _reference(x_t, w1, b1, w2, b2)
    out_t = se_block(x_t, w1, b1, w2, b2, force_two_pass=True,
                     hw_tile_bytes=C * 4 * _LANE)
    jax.block_until_ready(out_t)
    assert jnp.allclose(out_t, ref_t, atol=2e-5, rtol=2e-5), "masked-tail mismatch"

    print("KERNEL_OK")
</pallas_src>

<mosaic_0001>
module attributes {stable_mosaic.version = 11 : i64} {
  func.func @_fused_kernel(%arg0: i32, %arg1: memref<1x64x256xf32, #tpu.memory_space<vmem>>, %arg2: memref<64x4xf32, #tpu.memory_space<vmem>>, %arg3: memref<1x4xf32, #tpu.memory_space<vmem>>, %arg4: memref<4x64xf32, #tpu.memory_space<vmem>>, %arg5: memref<1x64xf32, #tpu.memory_space<vmem>>, %arg6: memref<1x64x256xf32, #tpu.memory_space<vmem>>) attributes {dimension_semantics = [#tpu.dimension_semantics<parallel>], iteration_bounds = array<i64: 2>, scalar_prefetch = 0 : i64, scratch_operands = 0 : i64, tpu.core_type = #tpu.core_type<tc>, window_params = [{transform_indices = @transform_0, window_bounds = array<i64: 1, 64, 256>}, {pipeline_mode = #tpu.pipeline_mode<synchronous>, transform_indices = @transform_1, window_bounds = array<i64: 64, 4>}, {pipeline_mode = #tpu.pipeline_mode<synchronous>, transform_indices = @transform_2, window_bounds = array<i64: 1, 4>}, {pipeline_mode = #tpu.pipeline_mode<synchronous>, transform_indices = @transform_3, window_bounds = array<i64: 4, 64>}, {pipeline_mode = #tpu.pipeline_mode<synchronous>, transform_indices = @transform_4, window_bounds = array<i64: 1, 64>}, {transform_indices = @transform_5, window_bounds = array<i64: 1, 64, 256>}]} {
    %c0 = arith.constant 0 : index
    %c0_0 = arith.constant 0 : index
    %c0_1 = arith.constant 0 : index
    %0 = vector.load %arg1[%c0, %c0_0, %c0_1] : memref<1x64x256xf32, #tpu.memory_space<vmem>>, vector<1x64x128xf32>
    %c0_2 = arith.constant 0 : index
    %c0_3 = arith.constant 0 : index
    %c128 = arith.constant 128 : index
    %1 = vector.load %arg1[%c0_2, %c0_3, %c128] : memref<1x64x256xf32, #tpu.memory_space<vmem>>, vector<1x64x128xf32>
    %2 = arith.addf %0, %1 : vector<1x64x128xf32>
    %cst = arith.constant dense<0.000000e+00> : vector<1x64xf32>
    %3 = vector.multi_reduction <add>, %2, %cst [2] : vector<1x64x128xf32> to vector<1x64xf32>
    %cst_4 = arith.constant 3.906250e-03 : f32
    %4 = vector.broadcast %cst_4 : f32 to vector<1x64xf32>
    %5 = arith.mulf %3, %4 : vector<1x64xf32>
    %c0_5 = arith.constant 0 : index
    %c0_6 = arith.constant 0 : index
    %6 = vector.load %arg2[%c0_5, %c0_6] : memref<64x4xf32, #tpu.memory_space<vmem>>, vector<64x4xf32>
    %cst_7 = arith.constant dense<0.000000e+00> : vector<1x4xf32>
    %7 = tpu.matmul %5, %6, %cst_7 {dimension_numbers = #tpu.dot_dimension_numbers<[1], [0], [0], [1], [0, 0, 1, 1], [], []>, precision = #tpu.contract_precision<fp32>} : vector<1x64xf32>, vector<64x4xf32>, vector<1x4xf32> -> vector<1x4xf32>
    %c0_8 = arith.constant 0 : index
    %c0_9 = arith.constant 0 : index
    %8 = vector.load %arg3[%c0_8, %c0_9] : memref<1x4xf32, #tpu.memory_space<vmem>>, vector<1x4xf32>
    %9 = arith.addf %7, %8 : vector<1x4xf32>
    %cst_10 = arith.constant 0.000000e+00 : f32
    %10 = vector.broadcast %cst_10 : f32 to vector<1x4xf32>
    %11 = arith.cmpf ogt, %9, %10 : vector<1x4xf32>
    %cst_11 = arith.constant 0.00999999977 : f32
    %12 = vector.broadcast %cst_11 : f32 to vector<1x4xf32>
    %13 = arith.mulf %12, %9 : vector<1x4xf32>
    %14 = arith.select %11, %9, %13 : vector<1x4xi1>, vector<1x4xf32>
    %c0_12 = arith.constant 0 : index
    %c0_13 = arith.constant 0 : index
    %15 = vector.load %arg4[%c0_12, %c0_13] : memref<4x64xf32, #tpu.memory_space<vmem>>, vector<4x64xf32>
    %cst_14 = arith.constant dense<0.000000e+00> : vector<1x64xf32>
    %16 = tpu.matmul %14, %15, %cst_14 {dimension_numbers = #tpu.dot_dimension_numbers<[1], [0], [0], [1], [0, 0, 1, 1], [], []>, precision = #tpu.contract_precision<fp32>} : vector<1x4xf32>, vector<4x64xf32>, vector<1x64xf32> -> vector<1x64xf32>
    %c0_15 = arith.constant 0 : index
    %c0_16 = arith.constant 0 : index
    %17 = vector.load %arg5[%c0_15, %c0_16] : memref<1x64xf32, #tpu.memory_space<vmem>>, vector<1x64xf32>
    %18 = arith.addf %16, %17 : vector<1x64xf32>
    %cst_17 = arith.constant 0.000000e+00 : f32
    %19 = vector.broadcast %cst_17 : f32 to vector<1x64xf32>
    %20 = arith.subf %19, %18 : vector<1x64xf32>
    %21 = math.exp %20 : vector<1x64xf32>
    %cst_18 = arith.constant 1.000000e+00 : f32
    %22 = vector.broadcast %cst_18 : f32 to vector<1x64xf32>
    %23 = arith.addf %22, %21 : vector<1x64xf32>
    %cst_19 = arith.constant 1.000000e+00 : f32
    %24 = vector.broadcast %cst_19 : f32 to vector<1x64xf32>
    %25 = arith.divf %24, %23 : vector<1x64xf32>
    %c0_20 = arith.constant 0 : index
    %c0_21 = arith.constant 0 : index
    %c0_22 = arith.constant 0 : index
    %26 = vector.load %arg1[%c0_20, %c0_21, %c0_22] : memref<1x64x256xf32, #tpu.memory_space<vmem>>, vector<1x64x256xf32>
    %27 = vector.shape_cast %25 : vector<1x64xf32> to vector<1x64x1xf32>
    %28 = vector.broadcast %27 : vector<1x64x1xf32> to vector<1x64x256xf32>
    %29 = arith.mulf %26, %28 : vector<1x64x256xf32>
    %c0_23 = arith.constant 0 : index
    %c0_24 = arith.constant 0 : index
    %c0_25 = arith.constant 0 : index
    %30 = vector.load %arg6[%c0_23, %c0_24, %c0_25] : memref<1x64x256xf32, #tpu.memory_space<vmem>>, vector<1x64x256xf32>
    tpu.vector_store %arg6[%c0_23, %c0_24, %c0_25], %29 {strides = array<i32>} : memref<1x64x256xf32, #tpu.memory_space<vmem>>, vector<1x64x256xf32>,
    return
  }
  func.func @transform_0(%arg0: i32) -> (i32, i32, i32) {
    %c0_i32 = arith.constant 0 : i32
    %c0_i32_0 = arith.constant 0 : i32
    %c0_i32_1 = arith.constant 0 : i32
    return %arg0, %c0_i32, %c0_i32_0 : i32, i32, i32
  }
  func.func @transform_1(%arg0: i32) -> (i32, i32) {
    %c0_i32 = arith.constant 0 : i32
    %c0_i32_0 = arith.constant 0 : i32
    %c0_i32_1 = arith.constant 0 : i32
    return %c0_i32, %c0_i32_0 : i32, i32
  }
  func.func @transform_2(%arg0: i32) -> (i32, i32) {
    %c0_i32 = arith.constant 0 : i32
    %c0_i32_0 = arith.constant 0 : i32
    %c0_i32_1 = arith.constant 0 : i32
    return %c0_i32, %c0_i32_0 : i32, i32
  }
  func.func @transform_3(%arg0: i32) -> (i32, i32) {
    %c0_i32 = arith.constant 0 : i32
    %c0_i32_0 = arith.constant 0 : i32
    %c0_i32_1 = arith.constant 0 : i32
    return %c0_i32, %c0_i32_0 : i32, i32
  }
  func.func @transform_4(%arg0: i32) -> (i32, i32) {
    %c0_i32 = arith.constant 0 : i32
    %c0_i32_0 = arith.constant 0 : i32
    %c0_i32_1 = arith.constant 0 : i32
    return %c0_i32, %c0_i32_0 : i32, i32
  }
  func.func @transform_5(%arg0: i32) -> (i32, i32, i32) {
    %c0_i32 = arith.constant 0 : i32
    %c0_i32_0 = arith.constant 0 : i32
    %c0_i32_1 = arith.constant 0 : i32
    return %arg0, %c0_i32, %c0_i32_0 : i32, i32, i32
  }
}

</mosaic_0001>

<bundles_post_ra>
// kernel: tpu_custom_call.1
= control target key start
LH: loop header
LB: loop body
LE: loop exit
PB: predicated region body
PF: predicated region fallthrough
CT: control target
= control target key end

     0   :  { %10 = vsyncpa [#allocation3], 0  ;;  %s2434_s0 = inlined_call_operand.hbm [shape: f32[2,64,256], index: 0, kind: input, shape index: {}]   ;;  %s2435_s1 = inlined_call_operand.vmem [shape: f32[64,4], index: 1, kind: input, shape index: {}]   ;;  %s2436_s2 = inlined_call_operand.vmem [shape: f32[1,4], index: 2, kind: input, shape index: {}]   ;;  %s2437_s3 = inlined_call_operand.vmem [shape: f32[4,64], index: 3, kind: input, shape index: {}]   ;;  %s2438_s4 = inlined_call_operand.vmem [shape: f32[1,64], index: 4, kind: input, shape index: {}]   ;;  %s2439_s5 = inlined_call_operand.hbm [shape: f32[2,64,256], index: 5, kind: output, shape index: {}]  }
   0x1   :  { %12 = vsyncpa [#allocation3 + $0x1], 0 }
   0x2   :  { %13 = vsyncpa [#allocation4], 0 }
   0x3   :  { %15 = vsyncpa [#allocation4 + $0x1], 0  ;;  %s1944_s18 = smov 0   ;;  %s1946_s19 = smov 0  }
   0x4   :  { %s1948_s20 = smov 0   ;;  %s1950_s21 = smov 0  }
   0x5 LB: > { %s1965_s22 = sadd.s32 4294967295, %s1904_s21   ;;  %s1530_s23 = sadd.s32 4294967294, %s1904_s21   ;;  %s1904_s21 = sphi %s1950_s21, %s2464_s21   ;;  %s1900_s20 = sphi %s1948_s20, %s2463_s20   ;;  %s1896_s19 = sphi %s1946_s19, %s2462_s19   ;;  %s1892_s18 = sphi %s1944_s18, %s2461_s18  }
   0x6   : > { %s1969_s24 = sadd.s32 1, %s1904_s21   ;;  %s28_s25 = sadd.s32 1, %s1900_s20 }
   0x7   : > { %s25_s26 = ssub.s32 %s1904_s21, %s1969_s24  ;;  %p35_p0 = scmp.ne.s32.totalorder %s1900_s20, %s1896_s19 }
   0x8   : > { %p26_p1 = scmp.eq.s32.totalorder %s25_s26, 0  ;;  %p36_p2 = scmp.eq.s32.totalorder %s1904_s21, 0 }
   0x9   : > { %p41_p3 = scmp.ne.s32.totalorder %s1896_s19, %s1892_s18  ;;  %p42_p4 = scmp.eq.s32.totalorder %s1965_s22, 0 }
   0xa   : > { %s1981_s27 = scalar_select %p26_p1, %s1900_s20, %s28_s25  }
   0xb   : > { %p1983_p5 = por %p36_p2, %p35_p0  ;;  %p1987_p6 = por %p42_p4, %p41_p3 }
   0xc   : > { %p149_p7 = scmp.eq.s32.totalorder %s1965_s22, 1  ;;  %p155_p8 = scmp.eq.s32.totalorder %s1530_s23, 1 }
   0xd   : > { %s2448_s29 = scalar_select %p1987_p6, 1, 0 }
   0xe   : > { %p1768_p10 = scmp.lt.s32.totalorder %s1904_s21, 2  ;;  %p1994_p11 = por %p149_p7, %p35_p0 }
   0xf   : > { %p1998_p12 = por %p155_p8, %p41_p3  ;;  %s187_s7 = sand.u32 1, %s1900_s20  }
  0x10   : > { %s2449_s30 = scalar_select %p1994_p11, 1, 0 }
  0x11   : > { %s2450_s6 = scalar_select %p1998_p12, 1, 0 }
  0x12   : > { %s1544_s8 = sshll.u32 %s1904_s21, 11  ;;  %s1533_s9 = sshll.u32 %s187_s7, 7 }
  0x13   : > { %s2007_s12 = scalar_lea.hbm %s2434_s0, %s1544_s8  ;;  %s191_s13 = scalar_lea.vmem [#allocation2], %s1533_s9 }
  0x14   : > { %s198_s14 = sshll.u32 %s191_s13, 4  ;;  %p2011_p13 = pnand %p1768_p10, %p1983_p5  ;;  %s2015_s14 = int_to_ptr.vmem [resolvable:$true] %s198_s14 }
  0x15   : > { %s2017_s16 = scalar_lea.sflag [#allocation3], %s187_s7  ;;  %s1812_s17 = scalar_lea.hbm %s2007_s12, 2048 }
  0x16   : > { %p1813_p0 = scmp.ne.s32.totalorder %s2007_s12, %s1812_s17  ;;  %p1814_p1 = pneg %p2011_p13 }
  0x17   : > { %s1817_s26 = scalar_lea.hbm %s2434_s0, 4096  ;;  %p1818_p4 = scmp.lt.s32.totalorder %s2007_s12, %s2434_s0 }
  0x18   : > { %p1815_p2 = pnand %p1814_p1, %p1813_p0  ;;  %p1819_p5 = scmp.lt.s32.totalorder %s1817_s26, %s1812_s17 }
  0x1a   : > { %p1816_p3 = pneg %p1815_p2  ;;  %p1820_p7 = por %p1819_p5, %p1818_p4 }
  0x1c   : > { %p1821_p8 = pnand %p1820_p7, %p1816_p3 }
  0x1e   : > { %1824 = shalt.err (!%p1821_p8)
}
  0x1f   : > { %s1825_s7 = scalar_lea.vmem %s2015_s14, 2048  ;;  %s1906_s9 = smov [#allocation2]  }
  0x20   : > { %p1826_p10 = scmp.ne.s32.totalorder %s2015_s14, %s1825_s7  ;;  %s1830_s10 = sshll.u32 %s1906_s9, 4  ;;  %s1831_s10 = int_to_ptr.vmem [resolvable:$false] %s1830_s10 }
  0x21   : > { %s1832_s11 = scalar_lea.vmem %s1831_s10, 4096  ;;  %p1833_p2 = scmp.lt.s32.totalorder %s2015_s14, %s1831_s10 }
  0x22   : > { %p1828_p9 = pnand %p1826_p10, %p1814_p1  ;;  %p1834_p12 = scmp.lt.s32.totalorder %s1832_s11, %s1825_s7 }
  0x24   : > { %p1829_p0 = pneg %p1828_p9  ;;  %p1835_p11 = por %p1834_p12, %p1833_p2 }
  0x26   : > { %p1836_p6 = pnand %p1835_p11, %p1829_p0 }
  0x28   : > { %1839 = shalt.err (!%p1836_p6)
}
  0x29   : > { %s1907_s13 = smov 256   ;;  %s1908_s17 = smov 16  }
  0x2a   : > { %1763 = dma.hbm_to_vmem [thread:$0]  (!%p2011_p13), %s2007_s12, 2048, %s2015_s14, %s2017_s16, %s1907_s13, %s1907_s13, %s1908_s17  }
  0x2b   : > { %p1536_p9 = scmp.ge.s32.totalorder %s1904_s21, 1  ;;  %p206_p1 = scmp.lt.s32.totalorder %s1904_s21, 3 }
  0x2d   : > { %p207_p3 = pnand %p1536_p9, %p206_p1 }
  0x2e   : > { %s2041_s23 = sand.u32 (!%p207_p3), 1, %s1896_s19   ;;  %p2452_p6 = scmp.ne.s32.totalorder (!%p207_p3), %s2448_s29, 0 }
  0x2f   : > { %210 = sbr.rel (%p207_p3) target bundleno = 856 (0x358), region = 40  ;;  %s1537_s25 = sshll.u32 (!%p207_p3), %s2041_s23, 7 }
  0x30   : > { %s213_s26 = scalar_lea.sflag (!%p207_p3), [#allocation3], %s2041_s23  ;;  %s216_s28 = scalar_lea.vmem (!%p207_p3), [#allocation2], %s1537_s25 }
  0x34   : > { %1883 = dma.done.wait (%p2452_p6), %s213_s26, 2048  }
  0x35   : > { %1885 = vsyncadd (%p2452_p6), %s213_s26, 4294965248  ;;  %v2051_v0 = vld [vmem:[%s216_s28] sm:$0xff]  ;;  %v2053_v1 = vld [vmem:[%s216_s28 + $0x8] sm:$0xff]  ;;  %v1909_v40 = vmov 0.0   ;;  %vm1910_vm0 = vmmov 0   ;;  %vm319_vm1 = vcmask 130112  }
  0x36   : > { %v2055_v2 = vld [vmem:[%s216_s28 + $0x20] sm:$0xff]  ;;  %v259_v3 = vadd.f32 %v2053_v1, %v2051_v0  ;;  %v2059_v4 = vld [vmem:[%s216_s28 + $0x28] sm:$0xff]  ;;  %v2061_v5 = vld [vmem:[%s216_s28 + $0x10] sm:$0xff]  ;;  %1631 = vmatprep.subr.mxu1 %v1909_v40  ;;  %1612 = vmatprep.subr.mxu0 %v1909_v40  ;;  %vm326_vm2 = vcmask 195712   ;;  %vm333_vm3 = vcmask 261312   ;;  %vm340_vm4 = vcmask 326912  }
  0x37   : > { %v2063_v6 = vld [vmem:[%s216_s28 + $0x18] sm:$0xff]  ;;  %v261_v7 = vadd.f32 %v2059_v4, %v2055_v2  ;;  %v2067_v8 = vld [vmem:[%s216_s28 + $0x30] sm:$0xff]  ;;  %v2075_v12 = vld [vmem:[%s216_s28 + $0x40] sm:$0xff]  ;;  %1647 = vmatprep.mubr.msk.f32.mxu1 %vm1910_vm0, %v1909_v40  ;;  %1628 = vmatprep.mubr.msk.f32.mxu0 %vm1910_vm0, %v1909_v40  ;;  %vm347_vm5 = vcmask 392512   ;;  %vm354_vm6 = vcmask 458112   ;;  %vm361_vm7 = vcmask 523712  }
  0x38   : > { %v2069_v9 = vld [vmem:[%s216_s28 + $0x38] sm:$0xff]  ;;  %267 = vadd.xlane.f32.xlu0 %v259_v3  ;;  %v260_v10 = vadd.f32 %v2063_v6, %v2061_v5  ;;  %v2077_v13 = vld [vmem:[%s216_s28 + $0x48] sm:$0xff]  ;;  %v2079_v14 = vld [vmem:[%s216_s28 + $0x50] sm:$0xff]  ;;  %vm363_vm8 = vcmask 523264   ;;  %vm912_vm9 = vcmask 1043456   ;;  %vm908_vm11 = vcmask 31744  }
  0x39   : > { %271 = vadd.xlane.f32.xlu1 %v261_v7  ;;  %v262_v11 = vadd.f32 %v2069_v9, %v2067_v8  ;;  %v2081_v15 = vld [vmem:[%s216_s28 + $0x58] sm:$0xff]  ;;  %v263_v16 = vadd.f32 %v2077_v13, %v2075_v12  ;;  %v2090_v19 = vld [vmem:[%s216_s28 + $0x60] sm:$0xff]  ;;  %v2092_v20 = vld [vmem:[%s216_s28 + $0x68] sm:$0xff]  ;;  %s2354_s10 = scalar_lea.vmem [#allocation5], %s1537_s25  ;;  %s1545_s25 = sshll.u32 %s1965_s22, 11 }
  0x3a   : > { %v298_v17 = vld [vmem:[%s2435_s1 + $0x38] sm:$0xff]  ;;  %v264_v18 = vadd.f32 %v2081_v15, %v2079_v14  ;;  %v2096_v22 = vld [vmem:[%s216_s28 + $0x70] sm:$0xff]  ;;  %v265_v27 = vadd.f32 %v2092_v20, %v2090_v19  ;;  %v296_v28 = vld [vmem:[%s2435_s1 + $0x28] sm:$0xff]  ;;  %s1457_s11 = sshll.u32 %s2354_s10, 4  ;;  %s2385_s26 = scalar_lea.hbm %s2439_s5, %s1545_s25  ;;  %s2387_s11 = int_to_ptr.vmem [resolvable:$true] %s1457_s11 }
  0x3b   : > { %v2094_v21 = vand.u32 4294901760, %v298_v17  ;;  %v2098_v23 = vld [vmem:[%s216_s28 + $0x78] sm:$0xff]  ;;  %v297_v24 = vld [vmem:[%s2435_s1 + $0x30] sm:$0xff]  ;;  %v2119_v32 = vand.u32 4294901760, %v296_v28  ;;  %v295_v33 = vld [vmem:[%s2435_s1 + $0x20] sm:$0xff]  ;;  %s1444_s22 = scalar_lea.sflag [#allocation4], %s2041_s23 }
  0x3c   : > { %269 = vadd.xlane.f32.xlu0 %v260_v10  ;;  %v2106_v26 = vand.u32 4294901760, %v297_v24  ;;  %v266_v29 = vadd.f32 %v2098_v23, %v2096_v22  ;;  %v2131_v37 = vand.u32 4294901760, %v295_v33  ;;  %v294_v38 = vld [vmem:[%s2435_s1 + $0x18] sm:$0xff]  ;;  %v293_v44 = vld [vmem:[%s2435_s1 + $0x10] sm:$0xff]  ;;  %v292_v50 = vld [vmem:[%s2435_s1 + $0x8] sm:$0xff]  ;;  %s1840_s28 = scalar_lea.vmem %s2387_s11, 2048 }
  0x3d   : > { %273 = vadd.xlane.f32.xlu1 %v262_v11  ;;  %v2104_v25 = vsub.f32 %v298_v17, %v2094_v21  ;;  %v2129_v36 = vsub.f32 %v296_v28, %v2119_v32  ;;  %1613 = vmatpush3.msra.mxu0 %v2094_v21  ;;  %v2149_v45 = vand.u32 4294901760, %v294_v38  ;;  %v2151_v46 = vand.u32 4294901760, %v293_v44  ;;  %v291_v55 = vld [vmem:[%s2435_s1] sm:$0xff]  ;;  %p1841_p11 = scmp.ne.s32.totalorder %s2387_s11, %s1840_s28  ;;  %p2458_p12 = scmp.ne.s32.totalorder %s2449_s30, 0 }
  0x3e   : > { %v2117_v31 = vsub.f32 %v297_v24, %v2106_v26  ;;  %v2142_v43 = vsub.f32 %v295_v33, %v2131_v37  ;;  %1614 = vmatprep.subr.mxu0 %v1909_v40  ;;  %v2169_v53 = vand.u32 4294901760, %v292_v50  ;;  %v2186_v60 = vand.u32 4294901760, %v291_v55  ;;  %s1911_s29 = smov [#allocation5]  }
  0x3f   : > { %v468_v30 = vand.u32 4294901760, %v2104_v25  ;;  %v482_v42 = vand.u32 4294901760, %v2129_v36  ;;  %v2163_v51 = vsub.f32 %v294_v38, %v2149_v45  ;;  %1615 = vmatpush3.msra.mxu0 %v2106_v26  ;;  %v2167_v52 = vsub.f32 %v293_v44, %v2151_v46  ;;  %p1842_p13 = pnand %p1841_p11, %p2458_p12  ;;  %s1844_s12 = sshll.u32 %s1911_s29, 4  ;;  %s1845_s12 = int_to_ptr.vmem [resolvable:$false] %s1844_s12 }
  0x40   : > { %275 = vadd.xlane.f32.xlu0 %v263_v16  ;;  %v475_v35 = vand.u32 4294901760, %v2117_v31  ;;  %v2446_v49 = vand.u32 4294901760, %v2142_v43  ;;  %1616 = vmatprep.subr.mxu0 %v1909_v40  ;;  %v2183_v59 = vsub.f32 %v292_v50, %v2169_v53  ;;  %v2198_v7 = vsub.f32 %v291_v55, %v2186_v60  ;;  %s1846_s14 = scalar_lea.vmem %s1845_s12, 4096  ;;  %p1847_p5 = scmp.lt.s32.totalorder %s2387_s11, %s1845_s12 }
  0x41   : > { %277 = vadd.xlane.f32.xlu1 %v264_v18  ;;  %v469_v34 = vsub.f32 %v2104_v25, %v468_v30  ;;  %v483_v48 = vsub.f32 %v2129_v36, %v482_v42  ;;  %v2445_v57 = vand.u32 4294901760, %v2163_v51  ;;  %v2444_v58 = vand.u32 4294901760, %v2167_v52  ;;  %1617 = vmatpush3.msra.mxu0 %v2119_v32  ;;  %p1843_p4 = pneg %p1842_p13  ;;  %p1848_p7 = scmp.lt.s32.totalorder %s1846_s14, %s1840_s28 }
  0x42   : > { %v476_v41 = vsub.f32 %v2117_v31, %v475_v35  ;;  %v490_v56 = vsub.f32 %v2142_v43, %v2446_v49  ;;  %1618 = vmatprep.subr.mxu0 %v1909_v40  ;;  %v2443_v3 = vand.u32 4294901760, %v2183_v59  ;;  %v2442_v17 = vand.u32 4294901760, %v2198_v7 }
  0x43   : > { %v470_v39 = vand.u32 4294901760, %v469_v34  ;;  %v484_v54 = vand.u32 4294901760, %v483_v48  ;;  %v497_v62 = vsub.f32 %v2163_v51, %v2445_v57  ;;  %v504_v63 = vsub.f32 %v2167_v52, %v2444_v58  ;;  %1619 = vmatpush3.msra.mxu0 %v2131_v37  ;;  %p1849_p8 = por %p1848_p7, %p1847_p5 }
  0x44   : > { %279 = vadd.xlane.f32.xlu0 %v265_v27  ;;  %v477_v47 = vand.u32 4294901760, %v476_v41  ;;  %v491_v61 = vand.u32 4294901760, %v490_v56  ;;  %1620 = vmatprep.subr.mxu0 %v1909_v40  ;;  %v511_v16 = vsub.f32 %v2183_v59, %v2443_v3  ;;  %v518_v24 = vsub.f32 %v2198_v7, %v2442_v17 }
  0x45   : > { %281 = vadd.xlane.f32.xlu1 %v266_v29  ;;  %1632 = vmatpush3.msra.mxu1 %v470_v39  ;;  %v498_v10 = vand.u32 4294901760, %v497_v62  ;;  %v505_v11 = vand.u32 4294901760, %v504_v63  ;;  %v308_v28 = vlaneseq  ;;  %p1850_p10 = pnand %p1849_p8, %p1843_p4 }
  0x46   : > { %1633 = vmatprep.subr.mxu1 %v1909_v40  ;;  %1621 = vmatpush3.msra.mxu0 %v2149_v45  ;;  %v512_v18 = vand.u32 4294901760, %v511_v16  ;;  %v519_v27 = vand.u32 4294901760, %v518_v24 }
  0x47   : > { %1634 = vmatpush3.msra.mxu1 %v477_v47  ;;  %1622 = vmatprep.subr.mxu0 %v1909_v40  ;;  %v309_v29 = vand.u32 127, %v308_v28  ;;  %v2225_v33 = vshrl.u32 %v308_v28, 7 }
  0x48   : > { %1635 = vmatprep.subr.mxu1 %v1909_v40  ;;  %1623 = vmatpush3.msra.mxu0 %v2151_v46 }
  0x49   : > { %1636 = vmatpush3.msra.mxu1 %v484_v54  ;;  %1624 = vmatprep.subr.mxu0 %v1909_v40  ;;  %v314_v34 = vadd.s32 4294967288, %v309_v29  ;;  %v321_v39 = vadd.s32 4294967280, %v309_v29  ;;  %v328_v41 = vadd.s32 4294967272, %v309_v29  ;;  %v312_v47 = vsub.s32 %v309_v29, %v2225_v33 }
  0x4a   : > { %1637 = vmatprep.subr.mxu1 %v1909_v40  ;;  %1625 = vmatpush3.msra.mxu0 %v2169_v53  ;;  %v335_v54 = vadd.s32 4294967264, %v309_v29  ;;  %v342_v63 = vadd.s32 4294967256, %v309_v29  ;;  %v349_v28 = vadd.s32 4294967248, %v309_v29 }
  0x4b   : > { %1638 = vmatpush3.msra.mxu1 %v491_v61  ;;  %1626 = vmatprep.subr.mxu0 %v1909_v40  ;;  %v317_v50 = vsub.s32 %v314_v34, %v2225_v33  ;;  %v324_v55 = vsub.s32 %v321_v39, %v2225_v33  ;;  %v331_v62 = vsub.s32 %v328_v41, %v2225_v33 }
  0x4c   : > { %1639 = vmatprep.subr.mxu1 %v1909_v40  ;;  %1627 = vmatpush3.msra.mxu0 %v2186_v60  ;;  %v345_v39 = vsub.s32 %v342_v63, %v2225_v33 }
  0x4d   : > { %1640 = vmatpush3.msra.mxu1 %v498_v10  ;;  %1650 = vmatprep.subr.mxu0 %v1909_v40 }
  0x4e   : > { %1641 = vmatprep.subr.mxu1 %v1909_v40 }
  0x4f   : > { %1642 = vmatpush3.msra.mxu1 %v505_v11 }
  0x50   : > { %1643 = vmatprep.subr.mxu1 %v1909_v40 }
  0x51   : > { %1644 = vmatpush3.msra.mxu1 %v512_v18 }
  0x52   : > { %1645 = vmatprep.subr.mxu1 %v1909_v40 }
  0x53   : > { %1646 = vmatpush3.msra.mxu1 %v519_v27  ;;  %v338_v27 = vsub.s32 %v335_v54, %v2225_v33 }
  0x54   : > { %1669 = vmatprep.subr.mxu1 %v1909_v40 }
  0xc1   : > { %v268_v38 = vpop.xlane.xlu0 %267 }
  0xc2   : > { %v272_v44 = vpop.xlane.xlu1 %271  ;;  %v283_v48 = vmul.f32 0.00390625, %v268_v38 }
  0xc3   : > { %v285_v56 = vmul.f32 0.00390625, %v272_v44  ;;  %v356_v44 = vadd.s32 4294967240, %v309_v29 }
  0xc4   : > { %v313_v18 = vrot.slane %v283_v48, %v312_v47  ;;  %v352_v47 = vsub.s32 %v349_v28, %v2225_v33 }
  0xc5   : > { %v270_v61 = vpop.xlane.xlu0 %269  ;;  %v325_v34 = vrot.slane %v285_v56, %v324_v55  ;;  %v359_v54 = vsub.s32 %v356_v44, %v2225_v33 }
  0xc6   : > { %v284_v10 = vmul.f32 0.00390625, %v270_v61  ;;  %v274_v11 = vpop.xlane.xlu1 %273 }
  0xc7   : > { %v286_v16 = vmul.f32 0.00390625, %v274_v11 }
  0xc8   : > { %v318_v24 = vrot.slane %v284_v10, %v317_v50 }
  0xc9   : > { %v332_v38 = vrot.slane %v286_v16, %v331_v62  ;;  %v276_v17 = vpop.xlane.xlu0 %275 }
  0xca   : > { %v320_v3 = vsel %vm319_vm1, %v318_v24, %v313_v18  ;;  %v287_v41 = vmul.f32 0.00390625, %v276_v17  ;;  %v278_v58 = vpop.xlane.xlu1 %277 }
  0xcb   : > { %v327_v61 = vsel %vm326_vm2, %v325_v34, %v320_v3  ;;  %v288_v57 = vmul.f32 0.00390625, %v278_v58  ;;  %v299_v34 = vld [vmem:[%s2436_s2] sm:$0x1] }
  0xcc   : > { %v334_v49 = vsel %vm333_vm3, %v332_v38, %v327_v61  ;;  %v339_v11 = vrot.slane %v287_v41, %v338_v27 }
  0xcd   : > { %v346_v48 = vrot.slane %v288_v57, %v345_v39  ;;  %v280_v50 = vpop.xlane.xlu0 %279 }
  0xce   : > { %v341_v55 = vsel %vm340_vm4, %v339_v11, %v334_v49  ;;  %v289_v56 = vmul.f32 0.00390625, %v280_v50  ;;  %v282_v62 = vpop.xlane.xlu1 %281 }
  0xcf   : > { %v290_v29 = vmul.f32 0.00390625, %v282_v62  ;;  %v348_v3 = vsel %vm347_vm5, %v346_v48, %v341_v55 }
  0xd0   : > { %v353_v17 = vrot.slane %v289_v56, %v352_v47 }
  0xd1   : > { %v360_v58 = vrot.slane %v290_v29, %v359_v54 }
  0xd2   : > { %v355_v63 = vsel %vm354_vm6, %v353_v17, %v348_v3 }
  0xd3   : > { %v362_v10 = vsel %vm361_vm7, %v360_v58, %v355_v63 }
  0xd4   : > { %v364_v16 = vsel %vm363_vm8, %v362_v10, 0 }
  0xd5   : > { %v2236_v18 = vand.u32 4294901760, %v364_v16 }
  0xd7   : > { %1648 = vmatmul.mubr.f32.vlgmr.msra.gmra.mxu1 %v2236_v18  ;;  %v440_v57 = vsub.f32 %v364_v16, %v2236_v18 }
  0xd8   : > { %1670 = vmatpush3.msra.mxu1 %v2094_v21  ;;  %1685 = vmatprep.mubr.msk.f32.mxu1 %vm1910_vm0, %v1909_v40 }
  0xd9   : > { %1671 = vmatprep.subr.mxu1 %v1909_v40  ;;  %v441_v49 = vand.u32 4294901760, %v440_v57 }
  0xda   : > { %1672 = vmatpush3.msra.mxu1 %v2106_v26 }
  0xdb   : > { %1673 = vmatprep.subr.mxu1 %v1909_v40  ;;  %v442_v24 = vsub.f32 %v440_v57, %v441_v49 }
  0xdc   : > { %1674 = vmatpush3.msra.mxu1 %v2119_v32 }
  0xdd   : > { %1675 = vmatprep.subr.mxu1 %v1909_v40  ;;  %v443_v27 = vand.u32 4294901760, %v442_v24 }
  0xde   : > { %1676 = vmatpush3.msra.mxu1 %v2131_v37 }
  0xdf   : > { %1677 = vmatprep.subr.mxu1 %v1909_v40  ;;  %1629 = vmatmul.mubr.f32.vlgmr.msra.gmra.mxu0 %v443_v27 }
  0xe0   : > { %1651 = vmatpush3.msra.mxu0 %v2104_v25  ;;  %1678 = vmatpush3.msra.mxu1 %v2149_v45  ;;  %v2454_v25 = vand.u32 4294901760, %v2163_v51 }
  0xe1   : > { %1652 = vmatprep.subr.mxu0 %v1909_v40  ;;  %1679 = vmatprep.subr.mxu1 %v1909_v40 }
  0xe2   : > { %1653 = vmatpush3.msra.mxu0 %v2117_v31  ;;  %1680 = vmatpush3.msra.mxu1 %v2151_v46  ;;  %v2457_v31 = vand.u32 4294901760, %v2198_v7 }
  0xe3   : > { %1654 = vmatprep.subr.mxu0 %v1909_v40  ;;  %1681 = vmatprep.subr.mxu1 %v1909_v40 }
  0xe4   : > { %1655 = vmatpush3.msra.mxu0 %v2129_v36  ;;  %1682 = vmatpush3.msra.mxu1 %v2169_v53 }
  0xe5   : > { %1656 = vmatprep.subr.mxu0 %v1909_v40  ;;  %1683 = vmatprep.subr.mxu1 %v1909_v40 }
  0xe6   : > { %1657 = vmatpush3.msra.mxu0 %v2142_v43  ;;  %1684 = vmatpush3.msra.mxu1 %v2186_v60 }
  0xe7   : > { %1658 = vmatprep.subr.mxu0 %v1909_v40  ;;  %1686 = vmatmul.mubr.f32.vlgmr.msra.gmra.mxu1 %v441_v49  ;;  %v907_v49 = vld [vmem:[%s2438_s4] sm:$0x1] }
  0xe8   : > { %1707 = vmatprep.subr.mxu1 %v1909_v40  ;;  %1659 = vmatpush3.msra.mxu0 %v2163_v51 }
  0xe9   : > { %1708 = vmatpush3.msra.mxu1 %v2094_v21  ;;  %1660 = vmatprep.subr.mxu0 %v1909_v40  ;;  %v2453_v21 = vand.u32 4294901760, %v2142_v43 }
  0xea   : > { %1709 = vmatprep.subr.mxu1 %v1909_v40  ;;  %1661 = vmatpush3.msra.mxu0 %v2167_v52 }
  0xeb   : > { %1710 = vmatpush3.msra.mxu1 %v2106_v26  ;;  %1662 = vmatprep.subr.mxu0 %v1909_v40  ;;  %v2455_v26 = vand.u32 4294901760, %v2167_v52 }
  0xec   : > { %1711 = vmatprep.subr.mxu1 %v1909_v40  ;;  %1663 = vmatpush3.msra.mxu0 %v2183_v59 }
  0xed   : > { %1712 = vmatpush3.msra.mxu1 %v2119_v32  ;;  %1664 = vmatprep.subr.mxu0 %v1909_v40  ;;  %v906_v32 = vld [vmem:[%s2437_s3] sm:$0xf] }
  0xee   : > { %1713 = vmatprep.subr.mxu1 %v1909_v40  ;;  %1665 = vmatpush3.msra.mxu0 %v2198_v7 }
  0xef   : > { %1666 = vmatprep.mubr.msk.f32.mxu0 %vm1910_vm0, %v1909_v40  ;;  %1714 = vmatpush3.msra.mxu1 %v2131_v37 }
  0xf0   : > { %1667 = vmatmul.mubr.f32.vlgmr.msra.gmra.mxu0 %v440_v57  ;;  %1688 = vmatprep.subr.mxu0 %v1909_v40 }
  0xf1   : > { %1715 = vmatprep.subr.mxu1 %v1909_v40  ;;  %1689 = vmatpush3.msra.mxu0 %v468_v30  ;;  %v2456_v30 = vand.u32 4294901760, %v2183_v59 }
  0xf2   : > { %1716 = vmatpush3.msra.mxu1 %v2149_v45  ;;  %1690 = vmatprep.subr.mxu0 %v1909_v40 }
  0xf3   : > { %1717 = vmatprep.subr.mxu1 %v1909_v40  ;;  %1691 = vmatpush3.msra.mxu0 %v475_v35  ;;  %v914_v35 = vsel %vm912_vm9, %v906_v32, 0 }
  0xf4   : > { %1718 = vmatpush3.msra.mxu1 %v2151_v46  ;;  %1692 = vmatprep.subr.mxu0 %v1909_v40  ;;  %v947_v36 = vand.u32 4294901760, %v914_v35 }
  0xf5   : > { %1719 = vmatprep.subr.mxu1 %v1909_v40  ;;  %1693 = vmatpush3.msra.mxu0 %v482_v42 }
  0xf6   : > { %1720 = vmatpush3.msra.mxu1 %v2169_v53  ;;  %1694 = vmatprep.subr.mxu0 %v1909_v40  ;;  %v1024_v37 = vsub.f32 %v914_v35, %v947_v36 }
  0xf7   : > { %1721 = vmatprep.subr.mxu1 %v1909_v40  ;;  %1695 = vmatpush3.msra.mxu0 %v2453_v21 }
  0xf8   : > { %1722 = vmatpush3.msra.mxu1 %v2186_v60  ;;  %1723 = vmatprep.mubr.msk.f32.mxu1 %vm1910_vm0, %v1909_v40  ;;  %v1025_v42 = vand.u32 4294901760, %v1024_v37 }
  0xf9   : > { %1696 = vmatprep.subr.mxu0 %v1909_v40  ;;  %1724 = vmatmul.mubr.f32.vlgmr.msra.gmra.mxu1 %v2236_v18 }
  0xfa   : > { %1697 = vmatpush3.msra.mxu0 %v2454_v25  ;;  %1704 = vmatprep.mubr.msk.f32.mxu0 %vm1910_vm0, %v1909_v40  ;;  %v1026_v43 = vsub.f32 %v1024_v37, %v1025_v42 }
  0xfb   : > { %1698 = vmatprep.subr.mxu0 %v1909_v40  ;;  %1731 = vmatprep.subr.mxu1 %v1909_v40 }
  0xfc   : > { %1699 = vmatpush3.msra.mxu0 %v2455_v26  ;;  %1733 = vmatprep.mubr.msk.f32.mxu1 %vm1910_vm0, %v1909_v40  ;;  %v1027_v45 = vand.u32 4294901760, %v1026_v43 }
  0xfd   : > { %1700 = vmatprep.subr.mxu0 %v1909_v40 }
  0xfe   : > { %1701 = vmatpush3.msra.mxu0 %v2456_v30  ;;  %1732 = vmatpush3.msra.mxu1 %v1027_v45 }
  0xff   : > { %1702 = vmatprep.subr.mxu0 %v1909_v40  ;;  %1741 = vmatprep.subr.mxu1 %v1909_v40 }
 0x100   : > { %1703 = vmatpush3.msra.mxu0 %v2457_v31 }
 0x101   : > { %1705 = vmatmul.mubr.f32.vlgmr.msra.gmra.mxu0 %v2236_v18  ;;  %1726 = vmatprep.subr.mxu0 %v1909_v40 }
 0x102   : > { %1728 = vmatprep.mubr.msk.f32.mxu0 %vm1910_vm0, %v1909_v40  ;;  %1727 = vmatpush3.msra.mxu0 %v947_v36 }
 0x103   : > { %1736 = vmatprep.subr.mxu0 %v1909_v40 }
 0x197   : > { %v556_v46 = vpop.f32.mrf.mxu1 }
 0x199   : > { %v1649_v51 = vpop.f32.mrf.mxu1 }
 0x19f   : > { %v445_v52 = vpop.f32.mrf.mxu0 }
 0x1a0   : > { %v446_v38 = vadd.f32 %v445_v52, %v299_v34 }
 0x1a1   : > { %v1630_v53 = vpop.f32.mrf.mxu0 }
 0x1a2   : > { %v557_v44 = vadd.f32 %v556_v46, %v446_v38  ;;  %v1378_v53 = vsub.s32 0, %v2225_v33 }
 0x1a7   : > { %v725_v59 = vpop.f32.mrf.mxu1 }
 0x1a9   : > { %v1687_v60 = vpop.f32.mrf.mxu1 }
 0x1b0   : > { %v644_v7 = vpop.f32.mrf.mxu0 }
 0x1b1   : > { %v645_v61 = vadd.f32 %v644_v7, %v557_v44 }
 0x1b2   : > { %v1668_v28 = vpop.f32.mrf.mxu0 }
 0x1b3   : > { %v726_v11 = vadd.f32 %v725_v59, %v645_v61 }
 0x1b9   : > { %v899_v39 = vpop.f32.mrf.mxu1 }
 0x1bb   : > { %v1725_v41 = vpop.f32.mrf.mxu1 }
 0x1c1   : > { %v820_v47 = vpop.f32.mrf.mxu0 }
 0x1c2   : > { %v821_v48 = vadd.f32 %v820_v47, %v726_v11 }
 0x1c3   : > { %v1706_v50 = vpop.f32.mrf.mxu0 }
 0x1c4   : > { %v900_v54 = vadd.f32 %v899_v39, %v821_v48 }
 0x1c6   : > { %vm903_vm10 = vcmp.gt.f32.partialorder %v900_v54, 0.0  ;;  %v904_v55 = vmul.f32 0.01, %v900_v54 }
 0x1c8   : > { %v905_v56 = vsel %vm903_vm10, %v900_v54, %v904_v55 }
 0x1c9   : > { %v910_v62 = vsel %vm908_vm11, %v905_v56, 0 }
 0x1ca   : > { %v982_v29 = vand.u32 4294901760, %v910_v62 }
 0x1cc   : > { %1734 = vmatmul.mubr.f32.vlgmr.msra.gmra.mxu1 %v982_v29  ;;  %v983_v17 = vsub.f32 %v910_v62, %v982_v29 }
 0x1cd   : > { %1742 = vmatpush3.msra.mxu1 %v947_v36  ;;  %1743 = vmatprep.mubr.msk.f32.mxu1 %vm1910_vm0, %v1909_v40 }
 0x1ce   : > { %v984_v3 = vand.u32 4294901760, %v983_v17  ;;  %1751 = vmatprep.subr.mxu1 %v1909_v40 }
 0x1d0   : > { %1744 = vmatmul.mubr.f32.vlgmr.msra.gmra.mxu1 %v984_v3  ;;  %v985_v58 = vsub.f32 %v983_v17, %v984_v3 }
 0x1d1   : > { %1752 = vmatpush3.msra.mxu1 %v947_v36  ;;  %1753 = vmatprep.mubr.msk.f32.mxu1 %vm1910_vm0, %v1909_v40 }
 0x1d2   : > { %v986_v63 = vand.u32 4294901760, %v985_v58 }
 0x1d4   : > { %1729 = vmatmul.mubr.f32.vlgmr.msra.gmra.mxu0 %v986_v63  ;;  %1754 = vmatmul.mubr.f32.vlgmr.msra.gmra.mxu1 %v982_v29 }
 0x1d5   : > { %1737 = vmatpush3.msra.mxu0 %v1024_v37  ;;  %1738 = vmatprep.mubr.msk.f32.mxu0 %vm1910_vm0, %v1909_v40 }
 0x1d6   : > { %1746 = vmatprep.subr.mxu0 %v1909_v40 }
 0x1d8   : > { %1739 = vmatmul.mubr.f32.vlgmr.msra.gmra.mxu0 %v983_v17 }
 0x1d9   : > { %1747 = vmatpush3.msra.mxu0 %v1025_v42  ;;  %1748 = vmatprep.mubr.msk.f32.mxu0 %vm1910_vm0, %v1909_v40 }
 0x1dc   : > { %1749 = vmatmul.mubr.f32.vlgmr.msra.gmra.mxu0 %v982_v29 }
 0x28c   : > { %v1064_v10 = vpop.f32.mrf.mxu1 }
 0x28e   : > { %v1735_v16 = vpop.f32.mrf.mxu1 }
 0x290   : > { %v1212_v18 = vpop.f32.mrf.mxu1 }
 0x292   : > { %v1745_v57 = vpop.f32.mrf.mxu1 }
 0x294   : > { %v988_v24 = vpop.f32.mrf.mxu0  ;;  %v1358_v27 = vpop.f32.mrf.mxu1 }
 0x295   : > { %v989_v21 = vadd.f32 %v988_v24, %v907_v49 }
 0x296   : > { %v1730_v25 = vpop.f32.mrf.mxu0  ;;  %v1755_v26 = vpop.f32.mrf.mxu1 }
 0x297   : > { %v1065_v30 = vadd.f32 %v1064_v10, %v989_v21 }
 0x298   : > { %v1138_v31 = vpop.f32.mrf.mxu0 }
 0x299   : > { %v1139_v32 = vadd.f32 %v1138_v31, %v1065_v30 }
 0x29a   : > { %v1740_v35 = vpop.f32.mrf.mxu0 }
 0x29b   : > { %v1213_v36 = vadd.f32 %v1212_v18, %v1139_v32 }
 0x29c   : > { %v1286_v40 = vpop.f32.mrf.mxu0 }
 0x29d   : > { %v1287_v37 = vadd.f32 %v1286_v40, %v1213_v36 }
 0x29e   : > { %v1750_v42 = vpop.f32.mrf.mxu0 }
 0x29f   : > { %v1359_v43 = vadd.f32 %v1358_v27, %v1287_v37 }
 0x2a1   : > { %v1362_v45 = vsub.f32 0.0, %v1359_v43 }
 0x2a3   : > { %v1363_v46 = vmul.f32 1.442695, %v1362_v45 }
 0x2a5   : > { %1808 = vpow2.f32 %v1363_v46 }
 0x2b2   : > { %v1809_v51 = vpop.eup %1808 }
 0x2b3   : > { %v1365_v52 = vadd.f32 1.0, %v1809_v51 }
 0x2b5   : > { %1810 = vrcp.f32 %v1365_v52 }
 0x2c2   : > { %v1811_v59 = vpop.eup %1810 }
 0x2c3   : > { %v1379_v60 = vrot.slane %v1811_v59, %v1378_v53 }
 0x2c5   : > { %1385 = vbcast.lane.b32.xlu1 %v1379_v60, 264  ;;  %1381 = vbcast.lane.b32.xlu0 %v1379_v60, 256 }
 0x2c9   : > { %1389 = vbcast.lane.b32.xlu1 %v1379_v60, 272  ;;  %1397 = vbcast.lane.b32.xlu0 %v1379_v60, 288 }
 0x2cd   : > { %1393 = vbcast.lane.b32.xlu1 %v1379_v60, 280  ;;  %1405 = vbcast.lane.b32.xlu0 %v1379_v60, 304 }
 0x2d1   : > { %1401 = vbcast.lane.b32.xlu1 %v1379_v60, 296 }
 0x2d5   : > { %1409 = vbcast.lane.b32.xlu1 %v1379_v60, 312 }
 0x337   : > { %v1386_v7 = vpop.permute.xlu1 %1385  ;;  %v1382_v28 = vpop.permute.xlu0 %1381 }
 0x338   : > { %v1413_v34 = vmul.f32 %v1386_v7, %v2061_v5  ;;  %v1414_v38 = vmul.f32 %v1386_v7, %v2063_v6  ;;  %v1411_v39 = vmul.f32 %v1382_v28, %v2051_v0  ;;  %v1412_v33 = vmul.f32 %v1382_v28, %v2053_v1 }
 0x33a   : > { %1429 = vst [vmem:[%s2354_s10 + $0x10] sm:$0xff] %v1413_v34  ;;  %1430 = vst [vmem:[%s2354_s10 + $0x18] sm:$0xff] %v1414_v38 }
 0x33b   : > { %1427 = vst [vmem:[%s2354_s10] sm:$0xff] %v1411_v39  ;;  %1428 = vst [vmem:[%s2354_s10 + $0x8] sm:$0xff] %v1412_v33  ;;  %v1390_v5 = vpop.permute.xlu1 %1389  ;;  %v1398_v0 = vpop.permute.xlu0 %1397 }
 0x33c   : > { %v1415_v1 = vmul.f32 %v1390_v5, %v2055_v2  ;;  %v1416_v6 = vmul.f32 %v1390_v5, %v2059_v4  ;;  %v1419_v44 = vmul.f32 %v1398_v0, %v2075_v12  ;;  %v1420_v41 = vmul.f32 %v1398_v0, %v2077_v13 }
 0x33e   : > { %1431 = vst [vmem:[%s2354_s10 + $0x20] sm:$0xff] %v1415_v1  ;;  %1432 = vst [vmem:[%s2354_s10 + $0x28] sm:$0xff] %v1416_v6 }
 0x33f   : > { %1435 = vst [vmem:[%s2354_s10 + $0x40] sm:$0xff] %v1419_v44  ;;  %1436 = vst [vmem:[%s2354_s10 + $0x48] sm:$0xff] %v1420_v41  ;;  %v1394_v61 = vpop.permute.xlu1 %1393  ;;  %v1406_v11 = vpop.permute.xlu0 %1405 }
 0x340   : > { %v1417_v2 = vmul.f32 %v1394_v61, %v2067_v8  ;;  %v1418_v47 = vmul.f32 %v1394_v61, %v2069_v9  ;;  %v1423_v4 = vmul.f32 %v1406_v11, %v2090_v19  ;;  %v1424_v12 = vmul.f32 %v1406_v11, %v2092_v20 }
 0x342   : > { %1433 = vst [vmem:[%s2354_s10 + $0x30] sm:$0xff] %v1417_v2  ;;  %1434 = vst [vmem:[%s2354_s10 + $0x38] sm:$0xff] %v1418_v47 }
 0x343   : > { %1439 = vst [vmem:[%s2354_s10 + $0x60] sm:$0xff] %v1423_v4  ;;  %1440 = vst [vmem:[%s2354_s10 + $0x68] sm:$0xff] %v1424_v12  ;;  %v1402_v13 = vpop.permute.xlu1 %1401 }
 0x344   : > { %v1421_v48 = vmul.f32 %v1402_v13, %v2079_v14  ;;  %v1422_v50 = vmul.f32 %v1402_v13, %v2081_v15 }
 0x346   : > { %1437 = vst [vmem:[%s2354_s10 + $0x50] sm:$0xff] %v1421_v48  ;;  %1438 = vst [vmem:[%s2354_s10 + $0x58] sm:$0xff] %v1422_v50 }
 0x347   : > { %v1410_v8 = vpop.permute.xlu1 %1409 }
 0x348   : > { %v1425_v9 = vmul.f32 %v1410_v8, %v2096_v22  ;;  %v1426_v14 = vmul.f32 %v1410_v8, %v2098_v23 }
 0x34a   : > { %1441 = vst [vmem:[%s2354_s10 + $0x70] sm:$0xff] %v1425_v9  ;;  %1442 = vst [vmem:[%s2354_s10 + $0x78] sm:$0xff] %v1426_v14 }
 0x34b   : > { %1853 = shalt.err (!%p1850_p10)
}
 0x34c   : > { %s1854_s15 = scalar_lea.hbm %s2385_s26, 2048  ;;  %s1858_s7 = scalar_lea.hbm %s2439_s5, 4096 }
 0x34d   : > { %p1855_p0 = scmp.ne.s32.totalorder %s2385_s26, %s1854_s15  ;;  %p1859_p1 = scmp.lt.s32.totalorder %s2385_s26, %s2439_s5 }
 0x34e   : > { %p1860_p3 = scmp.lt.s32.totalorder %s1858_s7, %s1854_s15 }
 0x34f   : > { %p1856_p2 = pnand %p1855_p0, %p2458_p12 }
 0x350   : > { %p1861_p6 = por %p1860_p3, %p1859_p1 }
 0x351   : > { %p1857_p9 = pneg %p1856_p2 }
 0x353   : > { %p1862_p11 = pnand %p1861_p6, %p1857_p9 }
 0x355   : > { %1865 = shalt.err (!%p1862_p11)
}
 0x356   : > { %s1912_s25 = smov 256   ;;  %s1913_s13 = smov 16  }
 0x357   : > { %1758 = dma.vmem_to_hbm [thread:$0]  (%p2458_p12), %s2387_s11, 2048, %s2385_s26, %s1444_s22, %s1912_s25, %s1912_s25, %s1913_s13  }
 0x358 PF: > { %s1472_s17 = sand.u32 1, %s1892_s18   ;;  %p2459_p13 = scmp.ne.s32.totalorder %s2450_s6, 0 }
 0x359   : > { %p2460_p4 = scmp.ge.s32.totalorder %s1904_s21, 2  ;;  %s1473_s28 = scalar_lea.sflag [#allocation4], %s1472_s17 }
 0x35b   : > { %p1765_p5 = pnand %p2460_p4, %p2459_p13 }
 0x35d   : > { %p1766_p7 = pneg %p1765_p5 }
 0x35f   : > { %1887 = dma.done.wait (%p1766_p7), %s1473_s28, 2048  }
 0x360   : > { %1889 = vsyncadd (%p1766_p7), %s1473_s28, 4294965248  ;;  %p18_p8 = scmp.ge.s32.totalorder %s1969_s24, 4   ;;  %s2461_s18 = smov %s1896_s19 }
 0x361   : > { %s2462_s19 = smov %s1900_s20  ;;  %s2463_s20 = smov %s1981_s27 }
 0x362   : > { %s2464_s21 = smov %s1969_s24  ;;  %20 = sbr.rel (!%p18_p8) target bundleno = 5 (0x5), region = 85 }
 0x367   :  { %1478 = vsyncpa [#allocation3], 1 }
 0x368   :  { %1480 = vsyncpa [#allocation3 + $0x1], 1 }
 0x369   :  { %1481 = vsyncpa [#allocation4], 1 }
 0x36a   :  { %1483 = vsyncpa [#allocation4 + $0x1], 1 }

</bundles_post_ra>
